<compile_context>
chip_gen: v7x
topology: tpu7x:2x2x1
jax: 0.10.0
libtpu: 0.0.40
codegen_flags: <defaults>
</compile_context>

<pallas_src>
import jax
import jax.numpy as jnp
from jax.experimental import pallas as pl
from jax.experimental.pallas import tpu as pltpu

ALPHA_NEG = 0.25   # alpha[0]
ALPHA_POS = 0.75   # alpha[1]
GAMMA = 2.0        # statically 2 -> use an explicit square, not lax.pow

LANES = 128
DEFAULT_TILE_ROWS = 512   # 512 x 128 x 4B = 256 KiB per f32 input block
                          # (2 inputs x 2 pipeline buffers = 1 MiB VMEM,
                          #  safe on v5e/v6e/v7x scoped-VMEM limits)


def _make_focal_kernel(tile_rows, n_valid, padded_n):
    """Build the per-block kernel with static tile size / valid-length baked in."""
    need_mask = padded_n != n_valid

    def kernel(x_ref, t_ref, out_ref):
        x = x_ref[...].astype(jnp.float32)
        t = t_ref[...].astype(jnp.float32)

        # Numerically stable BCE-with-logits (matches
        # F.binary_cross_entropy_with_logits):
        #   max(x, 0) - x*t + log(1 + exp(-|x|))
        bce = jnp.maximum(x, 0.0) - x * t + jnp.log1p(jnp.exp(-jnp.abs(x)))

        # at = alpha.gather(0, targets.long()):  0 -> 0.25, 1 -> 0.75
        at = jnp.where(t < 0.5, ALPHA_NEG, ALPHA_POS)

        pt = jnp.exp(-bce)
        omp = 1.0 - pt
        f_loss = at * (omp * omp) * bce      # gamma == 2 -> explicit square

        if need_mask:
            # Zero contributions from padded elements (global flat index >= N).
            base = pl.program_id(0) * (tile_rows * LANES)
            row = jax.lax.broadcasted_iota(jnp.int32, (tile_rows, LANES), 0)
            lane = jax.lax.broadcasted_iota(jnp.int32, (tile_rows, LANES), 1)
            gidx = base + row * LANES + lane
            f_loss = jnp.where(gidx < n_valid, f_loss, 0.0)

        # Pure-VPU partial reduction: fold the tile's rows into one (8, 128)
        # lane-dense block.  Final cross-lane sum happens in the wrapper.
        out_ref[...] = jnp.sum(f_loss.reshape(tile_rows // 8, 8, LANES), axis=0)

    return kernel


def _pick_tile_rows(rows):
    if rows >= DEFAULT_TILE_ROWS:
        return DEFAULT_TILE_ROWS
    return max(8, ((rows + 7) // 8) * 8)


def weighted_focal_loss(inputs, targets, tile_rows=None):
    """inputs, targets: 1-D arrays of identical length N (any N >= 1)."""
    x = jnp.ravel(inputs).astype(jnp.float32)
    t = jnp.ravel(targets).astype(jnp.float32)
    n = x.shape[0]
    assert t.shape[0] == n

    rows = pl.cdiv(n, LANES)
    if tile_rows is None:
        tile_rows = _pick_tile_rows(rows)
    assert tile_rows % 8 == 0
    num_blocks = pl.cdiv(rows, tile_rows)
    padded_rows = num_blocks * tile_rows
    padded_n = padded_rows * LANES

    pad = padded_n - n
    if pad:
        # Padded elements are masked out inside the kernel and the mean divides
        # by the original N, so padding does not change the result.
        x = jnp.pad(x, (0, pad))
        t = jnp.pad(t, (0, pad))

    x2d = x.reshape(padded_rows, LANES)
    t2d = t.reshape(padded_rows, LANES)

    kernel = _make_focal_kernel(tile_rows, n, padded_n)

    partials = pl.pallas_call(
        kernel,
        out_shape=jax.ShapeDtypeStruct((num_blocks * 8, LANES), jnp.float32),
        grid=(num_blocks,),
        in_specs=[
            pl.BlockSpec((tile_rows, LANES), lambda i: (i, 0)),
            pl.BlockSpec((tile_rows, LANES), lambda i: (i, 0)),
        ],
        out_specs=pl.BlockSpec((8, LANES), lambda i: (i, 0)),
        compiler_params=pltpu.CompilerParams(
            dimension_semantics=("parallel",),
        ),
    )(x2d, t2d)

    return (jnp.sum(partials) / jnp.float32(n)).astype(jnp.float32)


def _reference(inputs, targets):
    x = jnp.ravel(inputs).astype(jnp.float32)
    t = jnp.ravel(targets).astype(jnp.float32)
    bce = jnp.maximum(x, 0.0) - x * t + jnp.log1p(jnp.exp(-jnp.abs(x)))
    at = jnp.where(t < 0.5, ALPHA_NEG, ALPHA_POS)
    pt = jnp.exp(-bce)
    return jnp.mean(at * (1.0 - pt) ** GAMMA * bce)


if __name__ == "__main__":
    key = jax.random.PRNGKey(0)

    test_cases = [
        # (N, tile_rows override) -- small, deterministic shapes
        (1024, None),   # exact multiple of 128, single block
        (3000, None),   # ragged length -> exercises in-kernel padding mask
        (2048, 8),      # forced tiny tile -> exercises the multi-block grid
    ]

    for n_elems, tr in test_cases:
        key, k_logit, k_tgt = jax.random.split(key, 3)
        logits = jax.random.normal(k_logit, (n_elems,), dtype=jnp.float32)
        targets = jax.random.bernoulli(k_tgt, p=0.3, shape=(n_elems,)).astype(
            jnp.float32)

        loss = jax.block_until_ready(
            weighted_focal_loss(logits, targets, tile_rows=tr))
        ref = jax.block_until_ready(_reference(logits, targets))
        assert jnp.allclose(loss, ref, rtol=1e-5, atol=1e-6), (n_elems, loss, ref)

    print("KERNEL_OK")
</pallas_src>

<mosaic_0001>
module attributes {stable_mosaic.version = 11 : i64} {
  func.func @kernel(%arg0: i32, %arg1: memref<8x128xf32, #tpu.memory_space<vmem>>, %arg2: memref<8x128xf32, #tpu.memory_space<vmem>>, %arg3: memref<8x128xf32, #tpu.memory_space<vmem>>) attributes {dimension_semantics = [#tpu.dimension_semantics<parallel>], iteration_bounds = array<i64: 1>, scalar_prefetch = 0 : i64, scratch_operands = 0 : i64, tpu.core_type = #tpu.core_type<tc>, window_params = [{transform_indices = @transform_0, window_bounds = array<i64: 8, 128>}, {transform_indices = @transform_1, window_bounds = array<i64: 8, 128>}, {transform_indices = @transform_2, window_bounds = array<i64: 8, 128>}]} {
    %c0 = arith.constant 0 : index
    %c0_0 = arith.constant 0 : index
    %0 = vector.load %arg1[%c0, %c0_0] : memref<8x128xf32, #tpu.memory_space<vmem>>, vector<8x128xf32>
    %c0_1 = arith.constant 0 : index
    %c0_2 = arith.constant 0 : index
    %1 = vector.load %arg2[%c0_1, %c0_2] : memref<8x128xf32, #tpu.memory_space<vmem>>, vector<8x128xf32>
    %cst = arith.constant 0.000000e+00 : f32
    %2 = vector.broadcast %cst : f32 to vector<8x128xf32>
    %3 = arith.maximumf %0, %2 : vector<8x128xf32>
    %4 = arith.mulf %0, %1 : vector<8x128xf32>
    %5 = arith.subf %3, %4 : vector<8x128xf32>
    %6 = math.absf %0 : vector<8x128xf32>
    %cst_3 = arith.constant 0.000000e+00 : f32
    %7 = vector.broadcast %cst_3 : f32 to vector<8x128xf32>
    %8 = arith.subf %7, %6 : vector<8x128xf32>
    %9 = math.exp %8 : vector<8x128xf32>
    %10 = math.log1p %9 : vector<8x128xf32>
    %11 = arith.addf %5, %10 : vector<8x128xf32>
    %cst_4 = arith.constant 5.000000e-01 : f32
    %12 = vector.broadcast %cst_4 : f32 to vector<8x128xf32>
    %13 = arith.cmpf olt, %1, %12 : vector<8x128xf32>
    %cst_5 = arith.constant 2.500000e-01 : f32
    %cst_6 = arith.constant 7.500000e-01 : f32
    %14 = vector.broadcast %cst_5 : f32 to vector<8x128xf32>
    %15 = vector.broadcast %cst_6 : f32 to vector<8x128xf32>
    %16 = arith.select %13, %14, %15 : vector<8x128xi1>, vector<8x128xf32>
    %cst_7 = arith.constant 0.000000e+00 : f32
    %17 = vector.broadcast %cst_7 : f32 to vector<8x128xf32>
    %18 = arith.subf %17, %11 : vector<8x128xf32>
    %19 = math.exp %18 : vector<8x128xf32>
    %cst_8 = arith.constant 1.000000e+00 : f32
    %20 = vector.broadcast %cst_8 : f32 to vector<8x128xf32>
    %21 = arith.subf %20, %19 : vector<8x128xf32>
    %22 = arith.mulf %21, %21 : vector<8x128xf32>
    %23 = arith.mulf %16, %22 : vector<8x128xf32>
    %24 = arith.mulf %23, %11 : vector<8x128xf32>
    %25 = vector.shape_cast %24 : vector<8x128xf32> to vector<1x8x128xf32>
    %cst_9 = arith.constant dense<0.000000e+00> : vector<8x128xf32>
    %26 = vector.multi_reduction <add>, %25, %cst_9 [0] : vector<1x8x128xf32> to vector<8x128xf32>
    %c0_10 = arith.constant 0 : index
    %c0_11 = arith.constant 0 : index
    %27 = vector.load %arg3[%c0_10, %c0_11] : memref<8x128xf32, #tpu.memory_space<vmem>>, vector<8x128xf32>
    tpu.vector_store %arg3[%c0_10, %c0_11], %26 {strides = array<i32>} : memref<8x128xf32, #tpu.memory_space<vmem>>, vector<8x128xf32>,
    return
  }
  func.func @transform_0(%arg0: i32) -> (i32, i32) {
    %c0_i32 = arith.constant 0 : i32
    %c0_i32_0 = arith.constant 0 : i32
    return %arg0, %c0_i32 : i32, i32
  }
  func.func @transform_1(%arg0: i32) -> (i32, i32) {
    %c0_i32 = arith.constant 0 : i32
    %c0_i32_0 = arith.constant 0 : i32
    return %arg0, %c0_i32 : i32, i32
  }
  func.func @transform_2(%arg0: i32) -> (i32, i32) {
    %c0_i32 = arith.constant 0 : i32
    %c0_i32_0 = arith.constant 0 : i32
    return %arg0, %c0_i32 : i32, i32
  }
}

</mosaic_0001>

<bundles_post_ra>
// kernel: tpu_custom_call.1
= control target key start
LH: loop header
LB: loop body
LE: loop exit
PB: predicated region body
PF: predicated region fallthrough
CT: control target
= control target key end

     0   :  { %7 = vsyncpa [#allocation3], 0  ;;  %s219_s0 = inlined_call_operand.hbm [shape: f32[8,128], index: 0, kind: input, shape index: {}]   ;;  %s220_s1 = inlined_call_operand.hbm [shape: f32[8,128], index: 1, kind: input, shape index: {}]   ;;  %s221_s2 = inlined_call_operand.hbm [shape: f32[8,128], index: 2, kind: output, shape index: {}]  }
   0x1   :  { %8 = vsyncpa [#allocation6], 0 }
   0x2   :  { %9 = vsyncpa [#allocation4], 0  ;;  %s164_s9 = smov [#allocation2]   ;;  %s165_s11 = smov [#allocation5]  }
   0x3   :  { %s16_s10 = sshll.u32 %s164_s9, 4  ;;  %s26_s12 = sshll.u32 %s165_s11, 4  ;;  %s17_s10 = int_to_ptr.vmem [resolvable:$true] %s16_s10  ;;  %s27_s12 = int_to_ptr.vmem [resolvable:$true] %s26_s12 }
   0x4   :  { %s92_s15 = scalar_lea.hbm %s219_s0, 128 }
   0x5   :  { %p93_p0 = scmp.ne.s32.totalorder %s219_s0, %s92_s15  ;;  %p96_p1 = scmp.lt.u32.totalorder %s92_s15, %s219_s0 }
   0x7   :  { %p98_p2 = pnand %p96_p1, %p93_p0 }
   0x9   :  { %101 = shalt.err (!%p98_p2)
}
   0xa   :  { %s102_s20 = scalar_lea.vmem %s17_s10, 128  ;;  %p107_p4 = scmp.lt.s32.totalorder %s17_s10, %s17_s10 }
   0xb   :  { %p103_p3 = scmp.ne.s32.totalorder %s17_s10, %s102_s20  ;;  %p108_p5 = scmp.lt.s32.totalorder %s102_s20, %s102_s20 }
   0xd   :  { %p109_p6 = por %p108_p5, %p107_p4 }
   0xf   :  { %p110_p7 = pnand %p109_p6, %p103_p3 }
  0x11   :  { %113 = shalt.err (!%p110_p7)
}
  0x12   :  { %19 = dma.hbm_to_vmem [thread:$0]  %s219_s0, 128, %s17_s10, [#allocation3]  }
  0x13   :  { %s114_s25 = scalar_lea.hbm %s220_s1, 128 }
  0x14   :  { %p115_p8 = scmp.ne.s32.totalorder %s220_s1, %s114_s25  ;;  %p118_p9 = scmp.lt.u32.totalorder %s114_s25, %s220_s1 }
  0x16   :  { %p120_p10 = pnand %p118_p9, %p115_p8 }
  0x18   :  { %123 = shalt.err (!%p120_p10)
}
  0x19   :  { %s124_s30 = scalar_lea.vmem %s27_s12, 128  ;;  %p129_p12 = scmp.lt.s32.totalorder %s27_s12, %s27_s12 }
  0x1a   :  { %p125_p11 = scmp.ne.s32.totalorder %s27_s12, %s124_s30  ;;  %p130_p13 = scmp.lt.s32.totalorder %s124_s30, %s124_s30 }
  0x1c   :  { %p131_p0 = por %p130_p13, %p129_p12 }
  0x1e   :  { %p132_p1 = pnand %p131_p0, %p125_p11 }
  0x20   :  { %135 = shalt.err (!%p132_p1)
}
  0x21   :  { %29 = dma.hbm_to_vmem [thread:$0]  %s220_s1, 128, %s27_s12, [#allocation6]  }
  0x22   :  { %158 = dma.done.wait [#allocation3], 128  }
  0x23   :  { %159 = vsyncadd [#allocation3], 4294967168 }
  0x24   :  { %160 = dma.done.wait [#allocation6], 128  }
  0x25   :  { %161 = vsyncadd [#allocation6], 4294967168  ;;  %v36_v0 = vld [vmem:[#allocation2] sm:$0xff]  ;;  %v37_v7 = vld [vmem:[#allocation5] sm:$0xff]  ;;  %v166_v22 = vmov 0.75   ;;  %s167_s1 = smov [#allocation7]  }
  0x26   :  { %v41_v1 = vand.u32 2147483647, %v36_v0  ;;  %v38_v9 = vmax.f32 %v36_v0, 0.0  ;;  %v39_v10 = vmul.f32 %v37_v7, %v36_v0  ;;  %vm55_vm1 = vcmp.lt.f32.partialorder %v37_v7, 0.5  ;;  %s72_s4 = sshll.u32 %s167_s1, 4  ;;  %s73_s4 = int_to_ptr.vmem [resolvable:$true] %s72_s4 }
  0x27   :  { %v56_v23 = vsel %vm55_vm1, 0.25, %v166_v22  ;;  %s136_s5 = scalar_lea.vmem %s73_s4, 128  ;;  %p141_p3 = scmp.lt.s32.totalorder %s73_s4, %s73_s4 }
  0x28   :  { %v42_v2 = vsub.f32 0.0, %v41_v1  ;;  %v40_v14 = vsub.f32 %v38_v9, %v39_v10  ;;  %p137_p2 = scmp.ne.s32.totalorder %s73_s4, %s136_s5  ;;  %p142_p4 = scmp.lt.s32.totalorder %s136_s5, %s136_s5 }
  0x2a   :  { %v43_v3 = vmul.f32 1.442695, %v42_v2  ;;  %p143_p5 = por %p142_p4, %p141_p3 }
  0x2c   :  { %86 = vpow2.f32 %v43_v3  ;;  %p144_p6 = pnand %p143_p5, %p137_p2 }
  0x36   :  { %v87_v4 = vpop.eup %86 }
  0x37   :  { %v45_v5 = vadd.f32 1.0, %v87_v4  ;;  %v48_v6 = vmul.f32 -0.5, %v87_v4  ;;  %v51_v11 = vand.u32 2147483647, %v87_v4 }
  0x39   :  { %88 = vlog2.f32 %v45_v5  ;;  %v49_v8 = vadd.f32 1.0, %v48_v6  ;;  %vm52_vm0 = vcmp.lt.f32.partialorder %v51_v11, 0.0004427343 }
  0x3b   :  { %v50_v12 = vmul.f32 %v87_v4, %v49_v8 }
  0x43   :  { %v89_v13 = vpop.eup %88 }
  0x44   :  { %v47_v15 = vmul.f32 0.6931472, %v89_v13 }
  0x46   :  { %v53_v16 = vsel %vm52_vm0, %v50_v12, %v47_v15 }
  0x47   :  { %v54_v17 = vadd.f32 %v53_v16, %v40_v14 }
  0x49   :  { %v57_v18 = vsub.f32 0.0, %v54_v17 }
  0x4b   :  { %v58_v19 = vmul.f32 1.442695, %v57_v18 }
  0x4d   :  { %90 = vpow2.f32 %v58_v19 }
  0x57   :  { %v91_v20 = vpop.eup %90 }
  0x58   :  { %v60_v21 = vsub.f32 1.0, %v91_v20 }
  0x5a   :  { %v61_v24 = vmul.f32 %v60_v21, %v60_v21 }
  0x5c   :  { %v62_v25 = vmul.f32 %v61_v24, %v56_v23 }
  0x5e   :  { %v63_v26 = vmul.f32 %v62_v25, %v54_v17 }
  0x60   :  { %65 = vst [vmem:[#allocation7] sm:$0xff] %v63_v26 }
  0x61   :  { %147 = shalt.err (!%p144_p6)
}
  0x62   :  { %s148_s8 = scalar_lea.hbm %s221_s2, 128 }
  0x63   :  { %p149_p7 = scmp.ne.s32.totalorder %s221_s2, %s148_s8  ;;  %p152_p8 = scmp.lt.u32.totalorder %s148_s8, %s221_s2 }
  0x65   :  { %p154_p9 = pnand %p152_p8, %p149_p7 }
  0x67   :  { %157 = shalt.err (!%p154_p9)
}
  0x68   :  { %75 = dma.vmem_to_hbm [thread:$0]  %s73_s4, 128, %s221_s2, [#allocation4]  }
  0x69   :  { %162 = dma.done.wait [#allocation4], 128  }
  0x6a   :  { %163 = vsyncadd [#allocation4], 4294967168 }
  0x6b   :  { %79 = vsyncpa [#allocation3], 1 }
  0x6c   :  { %80 = vsyncpa [#allocation6], 1 }
  0x6d   :  { %81 = vsyncpa [#allocation4], 1 }

</bundles_post_ra>
